<compile_context>
chip_gen: v5e
topology: v5e:2x2
jax: 0.10.0
libtpu: 0.0.40
codegen_flags: <defaults>
</compile_context>

<pallas_src>
import functools
import math

import jax
import jax.numpy as jnp
from jax.experimental import pallas as pl
from jax.experimental.pallas import tpu as pltpu


_MASK_VALUE = -1e30  # finite "-inf": avoids inf*0 / inf-inf NaN traps


def _largest_block(n, target):
    """Largest divisor of `n` that is <= target and a multiple of 8.

    Falls back to `n` itself (block == full dim is always legal)."""
    if n <= target:
        return n
    for cand in range(min(target, n), 7, -1):
        if n % cand == 0 and cand % 8 == 0:
            return cand
    return n


# --------------------- flash kernel (output_attention=False) -----------------

def _flash_attention_kernel(q_ref, k_ref, v_ref, o_ref,
                            m_scr, l_scr, acc_scr, *,
                            scale, causal, q_block, kv_block):
    qi = pl.program_id(2)
    ki = pl.program_id(3)

    @pl.when(ki == 0)
    def _():
        m_scr[...] = jnp.full_like(m_scr, -jnp.inf)
        l_scr[...] = jnp.zeros_like(l_scr)
        acc_scr[...] = jnp.zeros_like(acc_scr)

    def compute_block():
        # Fold scale into Q (f32) before the MXU cast and before masking, so
        # the masked -inf values are never multiplied (robust for scale<=0).
        q = q_ref[...].astype(jnp.float32) * scale            # (tq, E)
        k = k_ref[...]                                          # (tk, E)
        s = jax.lax.dot_general(q.astype(k.dtype), k,
                                (((1,), (1,)), ((), ())),
                                preferred_element_type=jnp.float32)  # (tq, tk)
        if causal:
            row = qi * q_block + jax.lax.broadcasted_iota(jnp.int32, s.shape, 0)
            col = ki * kv_block + jax.lax.broadcasted_iota(jnp.int32, s.shape, 1)
            s = jnp.where(col > row, _MASK_VALUE, s)

        m_prev = m_scr[...]
        m_new = jnp.maximum(m_prev, jnp.max(s, axis=-1, keepdims=True))
        alpha = jnp.exp(m_prev - m_new)
        p = jnp.exp(s - m_new)                                  # f32 softmax math
        l_scr[...] = alpha * l_scr[...] + jnp.sum(p, axis=-1, keepdims=True)
        acc_scr[...] = alpha * acc_scr[...] + jax.lax.dot_general(
            p.astype(v_ref.dtype), v_ref[...],
            (((1,), (0,)), ((), ())), preferred_element_type=jnp.float32)
        m_scr[...] = m_new

    if causal:
        # Skip KV blocks lying entirely above the causal diagonal.
        pl.when(ki * kv_block <= qi * q_block + (q_block - 1))(compute_block)
    else:
        compute_block()

    @pl.when(ki == pl.num_programs(3) - 1)
    def _():
        # Deferred normalization: scale the (tq, D) output, not the (tq, S)
        # probabilities; reciprocal runs on the EUP (free VLIW slot).
        inv = pl.reciprocal(l_scr[...], approx=True)
        o_ref[...] = (acc_scr[...] * inv).astype(o_ref.dtype)


# ------------------ probs kernel (output_attention=True) ---------------------

def _attention_with_probs_kernel(q_ref, k_ref, v_ref, o_ref, a_ref, *,
                                 scale, causal, q_block):
    qi = pl.program_id(2)
    q = q_ref[...].astype(jnp.float32) * scale                  # (tq, E)
    k = k_ref[...]                                              # (S, E)
    s = jax.lax.dot_general(q.astype(k.dtype), k, (((1,), (1,)), ((), ())),
                            preferred_element_type=jnp.float32)  # (tq, S)
    if causal:
        row = qi * q_block + jax.lax.broadcasted_iota(jnp.int32, s.shape, 0)
        col = jax.lax.broadcasted_iota(jnp.int32, s.shape, 1)
        s = jnp.where(col > row, _MASK_VALUE, s)
    m = jnp.max(s, axis=-1, keepdims=True)
    p = jnp.exp(s - m)
    a = p / jnp.sum(p, axis=-1, keepdims=True)   # exact: A is user-visible
    # TODO(synk): nn.Dropout(attention_dropout) on A — identity in eval mode.
    a_ref[...] = a.astype(a_ref.dtype)
    o_ref[...] = jax.lax.dot_general(
        a.astype(v_ref.dtype), v_ref[...], (((1,), (0,)), ((), ())),
        preferred_element_type=jnp.float32).astype(o_ref.dtype)


# ------------------------------ Python wrapper -------------------------------

def full_attention(queries, keys, values, attn_mask=None, *, mask_flag=True,
                   scale=None, output_attention=False,
                   mxu_dtype=jnp.bfloat16, q_block_size=None,
                   kv_block_size=None):
    """Pallas equivalent of FullAttention.forward (eval mode).

    queries: (B, L, H, E), keys: (B, S, H, E), values: (B, S, H, D)
    Returns (V, A) with V: (B, L, H, D) and A: (B, H, L, S) or None.
    """
    B, L, H, E = queries.shape
    Bk, S, Hk, Ek = keys.shape
    Bv, Sv, Hv, D = values.shape
    assert (B, H, E) == (Bk, Hk, Ek) and (B, S, H) == (Bv, Sv, Hv)

    if attn_mask is not None:
        # TODO(synk): explicit attn_mask tensors are not plumbed into the
        # kernel; only the default TriangularCausalMask (attn_mask=None) path
        # of the PyTorch module is implemented.
        raise NotImplementedError("explicit attn_mask is not supported")

    scale = float(scale) if scale is not None else 1.0 / math.sqrt(E)
    causal = bool(mask_flag)
    out_dtype = queries.dtype

    # Heads onto the grid: (B, H, seq, feat) so every per-program block is a
    # lane-dense (rows, E/D) tile instead of a strided sublane gather.
    qh = jnp.transpose(queries, (0, 2, 1, 3))
    kh = jnp.transpose(keys, (0, 2, 1, 3))
    vh = jnp.transpose(values, (0, 2, 1, 3))
    if mxu_dtype is not None:
        qh, kh, vh = (x.astype(mxu_dtype) for x in (qh, kh, vh))

    tq = q_block_size or _largest_block(L, 128)
    tk = kv_block_size or _largest_block(S, 512)
    assert L % tq == 0 and S % tk == 0
    n_q = L // tq
    n_k = S // tk

    itemsize = jnp.dtype(qh.dtype).itemsize
    block_bytes = (2 * itemsize * (tq * E + tk * E + tk * D)   # dbl-buffered in
                   + 2 * 4 * tq * D                            # dbl-buffered out
                   + 4 * tq * (D + 2))                         # scratch
    vmem_limit = int(min(100 << 20, max(4 * block_bytes, 32 << 20)))

    flops = 2 * B * H * L * S * (E + D)
    if causal:
        flops //= 2
    cost = pl.CostEstimate(
        flops=int(flops),
        transcendentals=int(B * H * L * S),
        bytes_accessed=int((qh.size + kh.size + vh.size) * itemsize
                           + B * H * L * D * 4
                           + (B * H * L * S * 4 if output_attention else 0)))

    if not output_attention:
        kernel = functools.partial(_flash_attention_kernel, scale=scale,
                                   causal=causal, q_block=tq, kv_block=tk)
        o = pl.pallas_call(
            kernel,
            grid_spec=pltpu.PrefetchScalarGridSpec(
                num_scalar_prefetch=0,
                grid=(B, H, n_q, n_k),
                in_specs=[
                    pl.BlockSpec((None, None, tq, E),
                                 lambda b, h, qi, ki: (b, h, qi, 0)),
                    pl.BlockSpec((None, None, tk, E),
                                 lambda b, h, qi, ki: (b, h, ki, 0)),
                    pl.BlockSpec((None, None, tk, D),
                                 lambda b, h, qi, ki: (b, h, ki, 0)),
                ],
                out_specs=pl.BlockSpec((None, None, tq, D),
                                       lambda b, h, qi, ki: (b, h, qi, 0)),
                scratch_shapes=[pltpu.VMEM((tq, 1), jnp.float32),
                                pltpu.VMEM((tq, 1), jnp.float32),
                                pltpu.VMEM((tq, D), jnp.float32)]),
            out_shape=jax.ShapeDtypeStruct((B, H, L, D), out_dtype),
            compiler_params=pltpu.CompilerParams(
                dimension_semantics=("parallel", "parallel", "parallel",
                                     "arbitrary"),
                vmem_limit_bytes=vmem_limit),
            cost_estimate=cost,
        )(qh, kh, vh)
        attn = None
    else:
        kernel = functools.partial(_attention_with_probs_kernel, scale=scale,
                                   causal=causal, q_block=tq)
        o, attn = pl.pallas_call(
            kernel,
            grid_spec=pltpu.PrefetchScalarGridSpec(
                num_scalar_prefetch=0,
                grid=(B, H, n_q),
                in_specs=[
                    pl.BlockSpec((None, None, tq, E),
                                 lambda b, h, qi: (b, h, qi, 0)),
                    pl.BlockSpec((None, None, S, E),
                                 lambda b, h, qi: (b, h, 0, 0)),
                    pl.BlockSpec((None, None, S, D),
                                 lambda b, h, qi: (b, h, 0, 0)),
                ],
                out_specs=(
                    pl.BlockSpec((None, None, tq, D),
                                 lambda b, h, qi: (b, h, qi, 0)),
                    pl.BlockSpec((None, None, tq, S),
                                 lambda b, h, qi: (b, h, qi, 0)),
                )),
            out_shape=(jax.ShapeDtypeStruct((B, H, L, D), out_dtype),
                       jax.ShapeDtypeStruct((B, H, L, S), jnp.float32)),
            compiler_params=pltpu.CompilerParams(
                dimension_semantics=("parallel", "parallel", "parallel"),
                vmem_limit_bytes=vmem_limit),
            cost_estimate=cost,
        )(qh, kh, vh)

    v_out = jnp.transpose(o, (0, 2, 1, 3))   # (B, L, H, D)
    return v_out, attn


# ------------------------------ pure-JAX reference ---------------------------

def _full_attention_reference(queries, keys, values, *, scale, causal):
    L = queries.shape[1]
    S = keys.shape[1]
    scores = jnp.einsum('blhe,bshe->bhls', queries, keys,
                        precision=jax.lax.Precision.HIGHEST)
    if causal:
        mask = jnp.triu(jnp.ones((L, S), dtype=bool), k=1)
        scores = jnp.where(mask[None, None], -jnp.inf, scores)
    a = jax.nn.softmax(scale * scores, axis=-1)
    out = jnp.einsum('bhls,bshd->blhd', a, values,
                     precision=jax.lax.Precision.HIGHEST)
    return out, a


# ----------------------------------- main ------------------------------------

if __name__ == "__main__":
    B, L, S, H, E, D = 2, 16, 16, 4, 32, 32

    key = jax.random.PRNGKey(0)
    kq, kk, kv = jax.random.split(key, 3)
    queries = jax.random.normal(kq, (B, L, H, E), jnp.float32)
    keys = jax.random.normal(kk, (B, S, H, E), jnp.float32)
    values = jax.random.normal(kv, (B, S, H, D), jnp.float32)

    # Default module configuration: mask_flag=True, attn_mask=None (causal),
    # scale=None (1/sqrt(E)), output_attention=False, dropout in eval mode.
    v_out, attn = full_attention(queries, keys, values, attn_mask=None,
                                 mask_flag=True, scale=None,
                                 output_attention=False)
    v_out = jax.block_until_ready(v_out)
    assert v_out.shape == (B, L, H, D), v_out.shape
    assert attn is None
    assert bool(jnp.all(jnp.isfinite(v_out)))

    ref_v, ref_a = _full_attention_reference(
        queries, keys, values, scale=1.0 / math.sqrt(E), causal=True)
    assert bool(jnp.allclose(v_out, ref_v, atol=3e-2, rtol=3e-2)), \
        float(jnp.max(jnp.abs(v_out - ref_v)))

    # Full-f32 MXU path (mxu_dtype=None), tighter tolerance.
    v_f32, _ = full_attention(queries, keys, values, mask_flag=True,
                              output_attention=False, mxu_dtype=None)
    v_f32 = jax.block_until_ready(v_f32)
    assert bool(jnp.allclose(v_f32, ref_v, atol=1e-2, rtol=1e-2)), \
        float(jnp.max(jnp.abs(v_f32 - ref_v)))

    # Multi-block flash path: several KV blocks + causal block skipping.
    B2, L2, H2, E2 = 1, 128, 2, 64
    k2 = jax.random.split(jax.random.PRNGKey(1), 3)
    q2 = jax.random.normal(k2[0], (B2, L2, H2, E2), jnp.float32)
    kk2 = jax.random.normal(k2[1], (B2, L2, H2, E2), jnp.float32)
    vv2 = jax.random.normal(k2[2], (B2, L2, H2, E2), jnp.float32)
    v2_out, _ = full_attention(q2, kk2, vv2, mask_flag=True,
                               q_block_size=32, kv_block_size=32)
    v2_out = jax.block_until_ready(v2_out)
    v2_ref, _ = _full_attention_reference(
        q2, kk2, vv2, scale=1.0 / math.sqrt(E2), causal=True)
    assert bool(jnp.allclose(v2_out, v2_ref, atol=3e-2, rtol=3e-2)), \
        float(jnp.max(jnp.abs(v2_out - v2_ref)))

    # output_attention=True path.
    v_out2, attn2 = full_attention(queries, keys, values, attn_mask=None,
                                   mask_flag=True, scale=None,
                                   output_attention=True)
    v_out2, attn2 = jax.block_until_ready((v_out2, attn2))
    assert attn2.shape == (B, H, L, S), attn2.shape
    assert bool(jnp.allclose(jnp.sum(attn2, axis=-1),
                             jnp.ones((B, H, L)), atol=1e-4))
    assert bool(jnp.allclose(attn2, ref_a, atol=3e-2, rtol=3e-2))
    assert bool(jnp.allclose(v_out2, ref_v, atol=3e-2, rtol=3e-2))

    print("KERNEL_OK")
</pallas_src>

<mosaic_0001>
module attributes {stable_mosaic.version = 11 : i64} {
  func.func @_flash_attention_kernel(%arg0: i32, %arg1: i32, %arg2: i32, %arg3: i32, %arg4: memref<1x1x16x32xbf16, #tpu.memory_space<vmem>>, %arg5: memref<1x1x16x32xbf16, #tpu.memory_space<vmem>>, %arg6: memref<1x1x16x32xbf16, #tpu.memory_space<vmem>>, %arg7: memref<1x1x16x32xf32, #tpu.memory_space<vmem>>, %arg8: memref<16x1xf32, #tpu.memory_space<vmem>>, %arg9: memref<16x1xf32, #tpu.memory_space<vmem>>, %arg10: memref<16x32xf32, #tpu.memory_space<vmem>>) attributes {dimension_semantics = [#tpu.dimension_semantics<parallel>, #tpu.dimension_semantics<parallel>, #tpu.dimension_semantics<parallel>, #tpu.dimension_semantics<arbitrary>], iteration_bounds = array<i64: 2, 4, 1, 1>, scalar_prefetch = 0 : i64, scratch_operands = 3 : i64, tpu.core_type = #tpu.core_type<tc>, window_params = [{transform_indices = @transform_0, window_bounds = array<i64: 1, 1, 16, 32>}, {transform_indices = @transform_1, window_bounds = array<i64: 1, 1, 16, 32>}, {transform_indices = @transform_2, window_bounds = array<i64: 1, 1, 16, 32>}, {transform_indices = @transform_3, window_bounds = array<i64: 1, 1, 16, 32>}]} {
    %c0_i32 = arith.constant 0 : i32
    %0 = arith.cmpi eq, %arg3, %c0_i32 : i32
    %1 = arith.extui %0 : i1 to i32
    %c0_i32_0 = arith.constant 0 : i32
    %2 = arith.cmpi ne, %1, %c0_i32_0 : i32
    scf.if %2 {
      %cst = arith.constant 0xFF800000 : f32
      %12 = vector.broadcast %cst : f32 to vector<16x1xf32>
      %c0 = arith.constant 0 : index
      %c0_5 = arith.constant 0 : index
      %13 = vector.load %arg8[%c0, %c0_5] : memref<16x1xf32, #tpu.memory_space<vmem>>, vector<16x1xf32>
      tpu.vector_store %arg8[%c0, %c0_5], %12 {strides = array<i32>} : memref<16x1xf32, #tpu.memory_space<vmem>>, vector<16x1xf32>,
      %cst_6 = arith.constant 0.000000e+00 : f32
      %14 = vector.broadcast %cst_6 : f32 to vector<16x1xf32>
      %c0_7 = arith.constant 0 : index
      %c0_8 = arith.constant 0 : index
      %15 = vector.load %arg9[%c0_7, %c0_8] : memref<16x1xf32, #tpu.memory_space<vmem>>, vector<16x1xf32>
      tpu.vector_store %arg9[%c0_7, %c0_8], %14 {strides = array<i32>} : memref<16x1xf32, #tpu.memory_space<vmem>>, vector<16x1xf32>,
      %cst_9 = arith.constant 0.000000e+00 : f32
      %16 = vector.broadcast %cst_9 : f32 to vector<16x32xf32>
      %c0_10 = arith.constant 0 : index
      %c0_11 = arith.constant 0 : index
      %17 = vector.load %arg10[%c0_10, %c0_11] : memref<16x32xf32, #tpu.memory_space<vmem>>, vector<16x32xf32>
      tpu.vector_store %arg10[%c0_10, %c0_11], %16 {strides = array<i32>} : memref<16x32xf32, #tpu.memory_space<vmem>>, vector<16x32xf32>,
    } else {
    }
    %c16_i32 = arith.constant 16 : i32
    %3 = arith.muli %arg3, %c16_i32 : i32
    %c16_i32_1 = arith.constant 16 : i32
    %4 = arith.muli %arg2, %c16_i32_1 : i32
    %c15_i32 = arith.constant 15 : i32
    %5 = arith.addi %4, %c15_i32 : i32
    %6 = arith.cmpi sle, %3, %5 : i32
    %7 = arith.extui %6 : i1 to i32
    %c0_i32_2 = arith.constant 0 : i32
    %8 = arith.cmpi ne, %7, %c0_i32_2 : i32
    scf.if %8 {
      %c0 = arith.constant 0 : index
      %c0_5 = arith.constant 0 : index
      %c0_6 = arith.constant 0 : index
      %c0_7 = arith.constant 0 : index
      %12 = vector.load %arg4[%c0, %c0_5, %c0_6, %c0_7] : memref<1x1x16x32xbf16, #tpu.memory_space<vmem>>, vector<1x1x16x32xbf16>
      %13 = vector.shape_cast %12 : vector<1x1x16x32xbf16> to vector<16x32xbf16>
      %14 = arith.extf %13 : vector<16x32xbf16> to vector<16x32xf32>
      %cst = arith.constant 0.176776692 : f32
      %15 = vector.broadcast %cst : f32 to vector<16x32xf32>
      %16 = arith.mulf %14, %15 : vector<16x32xf32>
      %c0_8 = arith.constant 0 : index
      %c0_9 = arith.constant 0 : index
      %c0_10 = arith.constant 0 : index
      %c0_11 = arith.constant 0 : index
      %17 = vector.load %arg5[%c0_8, %c0_9, %c0_10, %c0_11] : memref<1x1x16x32xbf16, #tpu.memory_space<vmem>>, vector<1x1x16x32xbf16>
      %18 = vector.shape_cast %17 : vector<1x1x16x32xbf16> to vector<16x32xbf16>
      %19 = arith.truncf %16 : vector<16x32xf32> to vector<16x32xbf16>
      %cst_12 = arith.constant dense<0.000000e+00> : vector<16x16xf32>
      %20 = tpu.matmul %19, %18, %cst_12 {dimension_numbers = #tpu.dot_dimension_numbers<[1], [1], [0], [0], [0, 0, 1, 0], [], []>} : vector<16x32xbf16>, vector<16x32xbf16>, vector<16x16xf32> -> vector<16x16xf32>
      %c16_i32_13 = arith.constant 16 : i32
      %21 = arith.muli %arg2, %c16_i32_13 : i32
      %22 = tpu.iota {dimensions = array<i32: 0>} : vector<16x16xi32>
      %23 = vector.broadcast %21 : i32 to vector<16x16xi32>
      %24 = arith.addi %23, %22 : vector<16x16xi32>
      %c16_i32_14 = arith.constant 16 : i32
      %25 = arith.muli %arg3, %c16_i32_14 : i32
      %26 = tpu.iota {dimensions = array<i32: 1>} : vector<16x16xi32>
      %27 = vector.broadcast %25 : i32 to vector<16x16xi32>
      %28 = arith.addi %27, %26 : vector<16x16xi32>
      %29 = arith.cmpi sgt, %28, %24 : vector<16x16xi32>
      %cst_15 = arith.constant -1.000000e+30 : f32
      %30 = vector.broadcast %cst_15 : f32 to vector<16x16xf32>
      %31 = arith.select %29, %30, %20 : vector<16x16xi1>, vector<16x16xf32>
      %c0_16 = arith.constant 0 : index
      %c0_17 = arith.constant 0 : index
      %32 = vector.load %arg8[%c0_16, %c0_17] : memref<16x1xf32, #tpu.memory_space<vmem>>, vector<16x1xf32>
      %cst_18 = arith.constant dense<0xFF800000> : vector<16xf32>
      %33 = vector.multi_reduction <maximumf>, %31, %cst_18 [1] : vector<16x16xf32> to vector<16xf32>
      %34 = vector.shape_cast %33 : vector<16xf32> to vector<16x1xf32>
      %35 = arith.maximumf %32, %34 : vector<16x1xf32>
      %36 = arith.subf %32, %35 : vector<16x1xf32>
      %37 = math.exp %36 : vector<16x1xf32>
      %38 = vector.broadcast %35 : vector<16x1xf32> to vector<16x16xf32>
      %39 = arith.subf %31, %38 : vector<16x16xf32>
      %40 = math.exp %39 : vector<16x16xf32>
      %c0_19 = arith.constant 0 : index
      %c0_20 = arith.constant 0 : index
      %41 = vector.load %arg9[%c0_19, %c0_20] : memref<16x1xf32, #tpu.memory_space<vmem>>, vector<16x1xf32>
      %42 = arith.mulf %37, %41 : vector<16x1xf32>
      %cst_21 = arith.constant dense<0.000000e+00> : vector<16xf32>
      %43 = vector.multi_reduction <add>, %40, %cst_21 [1] : vector<16x16xf32> to vector<16xf32>
      %44 = vector.shape_cast %43 : vector<16xf32> to vector<16x1xf32>
      %45 = arith.addf %42, %44 : vector<16x1xf32>
      %c0_22 = arith.constant 0 : index
      %c0_23 = arith.constant 0 : index
      %46 = vector.load %arg9[%c0_22, %c0_23] : memref<16x1xf32, #tpu.memory_space<vmem>>, vector<16x1xf32>
      tpu.vector_store %arg9[%c0_22, %c0_23], %45 {strides = array<i32>} : memref<16x1xf32, #tpu.memory_space<vmem>>, vector<16x1xf32>,
      %c0_24 = arith.constant 0 : index
      %c0_25 = arith.constant 0 : index
      %47 = vector.load %arg10[%c0_24, %c0_25] : memref<16x32xf32, #tpu.memory_space<vmem>>, vector<16x32xf32>
      %48 = vector.broadcast %37 : vector<16x1xf32> to vector<16x32xf32>
      %49 = arith.mulf %48, %47 : vector<16x32xf32>
      %50 = arith.truncf %40 : vector<16x16xf32> to vector<16x16xbf16>
      %c0_26 = arith.constant 0 : index
      %c0_27 = arith.constant 0 : index
      %c0_28 = arith.constant 0 : index
      %c0_29 = arith.constant 0 : index
      %51 = vector.load %arg6[%c0_26, %c0_27, %c0_28, %c0_29] : memref<1x1x16x32xbf16, #tpu.memory_space<vmem>>, vector<1x1x16x32xbf16>
      %52 = vector.shape_cast %51 : vector<1x1x16x32xbf16> to vector<16x32xbf16>
      %cst_30 = arith.constant dense<0.000000e+00> : vector<16x32xf32>
      %53 = tpu.matmul %50, %52, %cst_30 {dimension_numbers = #tpu.dot_dimension_numbers<[1], [0], [0], [1], [0, 0, 1, 1], [], []>} : vector<16x16xbf16>, vector<16x32xbf16>, vector<16x32xf32> -> vector<16x32xf32>
      %54 = arith.addf %49, %53 : vector<16x32xf32>
      %c0_31 = arith.constant 0 : index
      %c0_32 = arith.constant 0 : index
      %55 = vector.load %arg10[%c0_31, %c0_32] : memref<16x32xf32, #tpu.memory_space<vmem>>, vector<16x32xf32>
      tpu.vector_store %arg10[%c0_31, %c0_32], %54 {strides = array<i32>} : memref<16x32xf32, #tpu.memory_space<vmem>>, vector<16x32xf32>,
      %c0_33 = arith.constant 0 : index
      %c0_34 = arith.constant 0 : index
      %56 = vector.load %arg8[%c0_33, %c0_34] : memref<16x1xf32, #tpu.memory_space<vmem>>, vector<16x1xf32>
      tpu.vector_store %arg8[%c0_33, %c0_34], %35 {strides = array<i32>} : memref<16x1xf32, #tpu.memory_space<vmem>>, vector<16x1xf32>,
    } else {
    }
    %c0_i32_3 = arith.constant 0 : i32
    %9 = arith.cmpi eq, %arg3, %c0_i32_3 : i32
    %10 = arith.extui %9 : i1 to i32
    %c0_i32_4 = arith.constant 0 : i32
    %11 = arith.cmpi ne, %10, %c0_i32_4 : i32
    scf.if %11 {
      %c0 = arith.constant 0 : index
      %c0_5 = arith.constant 0 : index
      %12 = vector.load %arg9[%c0, %c0_5] : memref<16x1xf32, #tpu.memory_space<vmem>>, vector<16x1xf32>
      %13 = tpu.reciprocal %12 {approx = true} : vector<16x1xf32> -> vector<16x1xf32>
      %c0_6 = arith.constant 0 : index
      %c0_7 = arith.constant 0 : index
      %14 = vector.load %arg10[%c0_6, %c0_7] : memref<16x32xf32, #tpu.memory_space<vmem>>, vector<16x32xf32>
      %15 = vector.broadcast %13 : vector<16x1xf32> to vector<16x32xf32>
      %16 = arith.mulf %14, %15 : vector<16x32xf32>
      %c0_8 = arith.constant 0 : index
      %c0_9 = arith.constant 0 : index
      %c0_10 = arith.constant 0 : index
      %c0_11 = arith.constant 0 : index
      %17 = vector.load %arg7[%c0_8, %c0_9, %c0_10, %c0_11] : memref<1x1x16x32xf32, #tpu.memory_space<vmem>>, vector<1x1x16x32xf32>
      %18 = vector.shape_cast %17 : vector<1x1x16x32xf32> to vector<16x32xf32>
      %19 = vector.shape_cast %16 : vector<16x32xf32> to vector<1x1x16x32xf32>
      tpu.vector_store %arg7[%c0_8, %c0_9, %c0_10, %c0_11], %19 {strides = array<i32>} : memref<1x1x16x32xf32, #tpu.memory_space<vmem>>, vector<1x1x16x32xf32>,
    } else {
    }
    return
  }
  func.func @transform_0(%arg0: i32, %arg1: i32, %arg2: i32, %arg3: i32) -> (i32, i32, i32, i32) {
    %c0_i32 = arith.constant 0 : i32
    %c0_i32_0 = arith.constant 0 : i32
    return %arg0, %arg1, %arg2, %c0_i32 : i32, i32, i32, i32
  }
  func.func @transform_1(%arg0: i32, %arg1: i32, %arg2: i32, %arg3: i32) -> (i32, i32, i32, i32) {
    %c0_i32 = arith.constant 0 : i32
    %c0_i32_0 = arith.constant 0 : i32
    return %arg0, %arg1, %arg3, %c0_i32 : i32, i32, i32, i32
  }
  func.func @transform_2(%arg0: i32, %arg1: i32, %arg2: i32, %arg3: i32) -> (i32, i32, i32, i32) {
    %c0_i32 = arith.constant 0 : i32
    %c0_i32_0 = arith.constant 0 : i32
    return %arg0, %arg1, %arg3, %c0_i32 : i32, i32, i32, i32
  }
  func.func @transform_3(%arg0: i32, %arg1: i32, %arg2: i32, %arg3: i32) -> (i32, i32, i32, i32) {
    %c0_i32 = arith.constant 0 : i32
    %c0_i32_0 = arith.constant 0 : i32
    return %arg0, %arg1, %arg2, %c0_i32 : i32, i32, i32, i32
  }
}

</mosaic_0001>

<bundles_post_ra>
// kernel: tpu_custom_call.1
= control target key start
LH: loop header
LB: loop body
LE: loop exit
PB: predicated region body
PF: predicated region fallthrough
CT: control target
= control target key end

     0   :  { %s1270_s0 = inlined_call_operand.hbm [shape: bf16[2,4,16,32], index: 0, kind: input, shape index: {}]   ;;  %s1271_s1 = inlined_call_operand.hbm [shape: bf16[2,4,16,32], index: 1, kind: input, shape index: {}]   ;;  %s1272_s2 = inlined_call_operand.hbm [shape: bf16[2,4,16,32], index: 2, kind: input, shape index: {}]   ;;  %s1273_s3 = inlined_call_operand.hbm [shape: f32[2,4,16,32], index: 3, kind: output, shape index: {}]  }
   0x1   :  { %1281 = sst [smem:[#allocation23_spill]] %s1271_s1 }
   0x2   :  { %8 = vsyncpa [#allocation6], 0 }
   0x3   :  { %10 = vsyncpa [#allocation6 + $0x1], 0 }
   0x4   :  { %11 = vsyncpa [#allocation9], 0 }
   0x5   :  { %13 = vsyncpa [#allocation9 + $0x1], 0 }
   0x6   :  { %14 = vsyncpa [#allocation7], 0 }
   0x7   :  { %16 = vsyncpa [#allocation7 + $0x1], 0  ;;  %s1064_s12 = smov 0   ;;  %s1066_s13 = smov 0  }
   0x8   :  { %s1068_s14 = smov 0   ;;  %s1070_s15 = smov 0  }
   0x9   :  { %s1072_s16 = smov 0   ;;  %s1074_s17 = smov 0  }
   0xa   :  { %s1076_s18 = smov 0   ;;  %s1078_s19 = smov 0  }
   0xb LB: > { %1282 = sst [smem:[#allocation15_spill]] %s1007_s12  ;;  %s1105_s20 = sadd.s32 4294967295, %s1035_s19   ;;  %s1035_s19 = sphi %s1078_s19, %s22_s19   ;;  %s1031_s18 = sphi %s1076_s18, %s1304_s18   ;;  %s1027_s17 = sphi %s1074_s17, %s1303_s17   ;;  %s1023_s16 = sphi %s1072_s16, %s1302_s16   ;;  %s1019_s15 = sphi %s1070_s15, %s1301_s15   ;;  %s1015_s14 = sphi %s1068_s14, %s1300_s14   ;;  %s1011_s13 = sphi %s1066_s13, %s1306_s13   ;;  %s1007_s12 = sphi %s1064_s12, %s1305_s12  }
   0xc   : > { %1283 = sst [smem:[#allocation16_spill]] %s1015_s14  ;;  %s691_s21 = sadd.s32 4294967294, %s1035_s19  }
   0xd   : > { %1284 = sst [smem:[#allocation17_spill]] %s1027_s17  ;;  %s44_s22 = sadd.s32 1, %s1027_s17 }
   0xe   : > { %1285 = sst [smem:[#allocation18_spill]] %s1031_s18  ;;  %s48_s23 = sadd.s32 1, %s1031_s18 }
   0xf   : > { %p46_p0 = scmp.ge.s32.totalorder %s44_s22, 4  ;;  %s59_s24 = sadd.s32 1, %s1015_s14 }
  0x10   : > { %p66_p1 = scmp.ne.s32.totalorder %s1015_s14, %s1011_s13  ;;  %p67_p2 = scmp.eq.s32.totalorder %s1035_s19, 0 }
  0x11   : > { %s1308_s22 = smov (%p46_p0, %s44_s22), 0  ;;  %s1310_s23 = smov (!%p46_p0, %s48_s23), %s1031_s18 }
  0x12   : > { %1286 = sst [smem:[#allocation19_spill]] %s1308_s22  ;;  %s53_s25 = ssub.s32 %s1027_s17, %s1308_s22 }
  0x13   : > { %p1119_p3 = por %p67_p2, %p66_p1  ;;  %p50_p4 = scmp.ge.s32.totalorder %s1310_s23, 2 }
  0x14   : > { %p72_p5 = scmp.ne.s32.totalorder %s1011_s13, %s1007_s12  ;;  %p73_p6 = scmp.eq.s32.totalorder %s1105_s20, 0 }
  0x15   : > { %p160_p7 = scmp.eq.s32.totalorder %s1105_s20, 7  ;;  %s1312_s23 = smov (%p50_p4, %s1310_s23), 0 }
  0x16   : > { %1288 = sst [smem:[#allocation20_spill]] %s1312_s23  ;;  %p1129_p8 = por %p73_p6, %p72_p5 }
  0x17   : > { %p1133_p9 = por %p160_p7, %p66_p1  ;;  %s52_s29 = ssub.s32 %s1031_s18, %s1312_s23 }
  0x18   : > { %p166_p10 = scmp.eq.s32.totalorder %s691_s21, 7  ;;  %s54_s30 = sor.u32 %s53_s25, %s52_s29 }
  0x19   : > { %p57_p11 = scmp.eq.s32.totalorder %s54_s30, 0  ;;  %p755_p13 = scmp.lt.s32.totalorder %s1035_s19, 8 }
  0x1a   : > { %p1139_p12 = por %p166_p10, %p72_p5  ;;  %s186_s5 = sand.u32 1, %s1015_s14  }
  0x1b   : > { %s1146_s6 = scalar_select %p57_p11, %s1015_s14, %s59_s24  }
  0x1c   : > { %s1291_s4 = scalar_select %p1139_p12, 1, 0 }
  0x1d   : > { %1293 = sst [smem:[#allocation22_spill]] %s1146_s6  ;;  %s1148_s7 = sshll.u32 %s186_s5, 3 }
  0x1e   : > { %1292 = sst [smem:[#allocation21_spill]] %s1291_s4  ;;  %s695_s8 = sshll.u32 %s1027_s17, 1 }
  0x1f   : > { %s696_s9 = sshll.u32 %s1031_s18, 3  ;;  %p1154_p0 = pnand %p755_p13, %p1119_p3 }
  0x20   : > { %s197_s11 = sadd.s32 %s696_s9, %s695_s8  ;;  %s212_s25 = sand.u32 1, %s1035_s19  }
  0x21   : > { %s697_s21 = sshll.u32 %s197_s11, 2  ;;  %s1295_s1 = sld [smem:[#allocation23_spill]] }
  0x22   : > { %s216_s23 = scalar_lea.vmem [#allocation8], %s1148_s7  ;;  %p706_p1 = scmp.ge.s32.totalorder %s1035_s19, 1 }
  0x23   : > { %s228_s22 = sshll.u32 %s216_s23, 4  ;;  %s213_s26 = scalar_lea.sflag [#allocation9], %s212_s25  ;;  %s229_s22 = int_to_ptr.vmem [resolvable:$true] %s228_s22 }
  0x24   : > { %s1037_s18 = smov 64   ;;  %s1038_s17 = smov 4  }
  0x25   : > { %p262_p2 = scmp.lt.s32.totalorder %s1035_s19, 9  ;;  %s199_s23 = scalar_lea.hbm %s1270_s0, %s697_s21 }
  0x26   : > { %s190_s29 = scalar_lea.vmem [#allocation5], %s1148_s7  ;;  %s187_s25 = scalar_lea.sflag [#allocation6], %s186_s5 }
  0x27   : > { %s225_s24 = scalar_lea.hbm %s1295_s1, %s697_s21  ;;  %p1167_p3 = pnand %p706_p1, %p262_p2 }
  0x28   : > { %s226_s6 = sshll.u32 %s225_s24, 4  ;;  %s202_s30 = sshll.u32 %s190_s29, 4  ;;  %s227_s6 = int_to_ptr.hbm [resolvable:$true] %s226_s6  ;;  %s203_s30 = int_to_ptr.vmem [resolvable:$true] %s202_s30 }
  0x29   : > { %747 = dma.hbm_to_vmem [thread:$0]  (!%p1154_p0), %s227_s6, 128, %s229_s22, %s213_s26, %s1037_s18, %s1037_s18, %s1038_s17  }
  0x2a   : > { %s200_s24 = sshll.u32 %s199_s23, 4  ;;  %s251_s6 = scalar_lea.hbm %s1272_s2, %s697_s21  ;;  %s201_s24 = int_to_ptr.hbm [resolvable:$true] %s200_s24 }
  0x2b   : > { %744 = dma.hbm_to_vmem [thread:$0]  (!%p1154_p0), %s201_s24, 128, %s203_s30, %s187_s25, %s1037_s18, %s1037_s18, %s1038_s17  }
  0x2c   : > { %s242_s14 = scalar_lea.vmem [#allocation10], %s1148_s7  ;;  %s252_s12 = sshll.u32 %s251_s6, 4  ;;  %s253_s12 = int_to_ptr.hbm [resolvable:$true] %s252_s12 }
  0x2d   : > { %s254_s4 = sshll.u32 %s242_s14, 4  ;;  %266 = sbr.rel (%p1167_p3) target bundleno = 698 (0x2ba), region = 32  ;;  %s255_s4 = int_to_ptr.vmem [resolvable:$true] %s254_s4 }
  0x2e   : > { %750 = dma.hbm_to_vmem [thread:$0]  (!%p1154_p0), %s253_s12, 128, %s255_s4, %s213_s26, %s1037_s18, %s1037_s18, %s1038_s17  }
  0x2f   : > { %s1186_s9 = sand.u32 (!%p1167_p3), 1, %s1011_s13  }
  0x30   : > { %s1189_s5 = sshll.u32 (!%p1167_p3), %s1186_s9, 3  ;;  %s269_s1 = scalar_lea.sflag (!%p1167_p3), [#allocation6], %s1186_s9 }
  0x31   : > { %s272_s7 = scalar_lea.vmem (!%p1167_p3), [#allocation5], %s1189_s5 }
  0x32   : > { %994 = dma.done.wait (%p1129_p8), %s269_s1, 128  }
  0x33   : > { %996 = vsyncadd (%p1129_p8), %s269_s1, 4294967168  ;;  %s278_s12 = sand.u32 1, %s1105_s20   ;;  %s282_s17 = scalar_lea.vmem [#allocation8], %s1189_s5 }
  0x34   : > { %s279_s14 = scalar_lea.sflag [#allocation9], %s278_s12 }
  0x35   : > { %998 = dma.done.wait (%p1129_p8), %s279_s14, 256  }
  0x36   : > { %1000 = vsyncadd (%p1129_p8), %s279_s14, 4294967040  ;;  %vm340_vm0 = vcmask 261120   ;;  %v1039_v0 = vmov 0.0   ;;  %v727_v1 = vld [vmem:[%s282_s17] sm:$0xff]  ;;  %v730_v2 = vld [vmem:[%s272_s7] sm:$0xff]   ;;  %vm335_vm1 = vcmask 7168   ;;  %v385_v10 = vlaneseq }
  0x37   : > { %341 = vst.msk [vmem:[#allocation4] sm:$0xff] %vm340_vm0, %v1039_v0  ;;  %v731_v3 = vunpack.c.l.bf16 %v730_v2  ;;  %v732_v4 = vunpack.c.h.bf16 %v730_v2  ;;  %v369_v5 = vsel %vm340_vm0, %v727_v1, 0  ;;  %v1040_v9 = vmov -inf   ;;  %s292_s18 = scalar_lea.vmem [#allocation10], %s1189_s5  ;;  %s710_s20 = sshll.u32 %s1186_s9, 4 }
  0x38   : > { %342 = vst.msk [vmem:[#allocation4 + $0x8] sm:$0xff] %vm340_vm0, %v1039_v0  ;;  %378 = vmatpush.bf16.xpose.msra.mxu0 %v369_v5  ;;  %v386_v11 = vshrl.u32 %v385_v10, 7  ;;  %v392_v12 = vand.u32 127, %v385_v10  ;;  %vm401_vm3 = vcmask 130048   ;;  %v1041_v20 = vmov 0   ;;  %v728_v33 = vld [vmem:[%s292_s18] sm:$0xff] }
  0x39   : > { %v354_v6 = vmul.f32 0.17677669, %v731_v3  ;;  %v355_v7 = vmul.f32 0.17677669, %v732_v4  ;;  %336 = vst.msk [vmem:[#allocation2] sm:$0xff] %vm335_vm1, %v1040_v9  ;;  %828 = vset.pattern.permute.xlu1 %v1041_v20  ;;  %829 = vset.pattern.permute.xlu0 %v1041_v20  ;;  %s325_s27 = scalar_lea.vmem [#allocation11], %s710_s20 }
  0x3a   : > { %337 = vst.msk [vmem:[#allocation2 + $0x8] sm:$0xff] %vm335_vm1, %v1040_v9  ;;  %vm395_vm2 = vcmp.gt.s32.totalorder %v392_v12, %v386_v11  ;;  %v387_v16 = vadd.s32 8, %v386_v11  ;;  %830 = vset.pattern.permute.xlu2 %v1041_v20  ;;  %480 = vmatpush.bf16.msra.mxu1 %v728_v33  ;;  %s722_s4 = sshll.u32 %s1019_s15, 1  ;;  %s723_s10 = sshll.u32 %s1023_s16, 3 }
  0x3b   : > { %v358_v8 = vpack.c.bf16 %v355_v7, %v354_v6  ;;  %338 = vst.msk [vmem:[#allocation3] sm:$0xff] %vm335_vm1, %v1039_v0  ;;  %s531_s21 = sadd.s32 %s723_s10, %s722_s4  ;;  %s534_s29 = sshll.u32 %s325_s27, 4  ;;  %s535_s29 = int_to_ptr.vmem [resolvable:$true] %s534_s29 }
  0x3c   : > { %339 = vst.msk [vmem:[#allocation3 + $0x8] sm:$0xff] %vm335_vm1, %v1039_v0  ;;  %vm396_vm4 = vcmp.gt.s32.totalorder %v392_v12, %v387_v16  ;;  %s724_s26 = sshll.u32 %s531_s21, 3  ;;  %s518_s24 = scalar_lea.sflag [#allocation7], %s1186_s9 }
  0x3d   : > { %s533_s23 = scalar_lea.hbm %s1273_s3, %s724_s26  ;;  %s953_s6 = scalar_lea.hbm %s1273_s3, 128 }
  0x3e   : > { %v447_v54 = vld [vmem:[#allocation4] sm:$0xff]  ;;  %s536_s30 = sshll.u32 %s533_s23, 4  ;;  %s537_s30 = int_to_ptr.hbm [resolvable:$true] %s536_s30 }
  0x3f   : > { %715 = vmatmul.msk.bf16.vlgmr.msra.gmra.mxu0 %vm340_vm0, %v358_v8  ;;  %v448_v61 = vld [vmem:[#allocation4 + $0x8] sm:$0xff]  ;;  %s947_s25 = sshra.s32 %s537_s30, 4  ;;  %s948_s25 = int_to_ptr.hbm [resolvable:$true] %s947_s25 }
  0x40   : > { %v399_v21 = vld [vmem:[#allocation2] sm:$0xff]  ;;  %s949_s15 = scalar_lea.hbm %s948_s25, 16  ;;  %p954_p7 = scmp.lt.s32.totalorder %s948_s25, %s1273_s3 }
  0x41   : > { %v400_v26 = vld [vmem:[#allocation2 + $0x8] sm:$0xff]  ;;  %p950_p4 = scmp.ne.s32.totalorder %s948_s25, %s949_s15  ;;  %p955_p8 = scmp.lt.s32.totalorder %s953_s6, %s949_s15 }
  0x42   : > { %v432_v45 = vld [vmem:[#allocation3] sm:$0xff] }
  0x43   : > { %v433_v49 = vld [vmem:[#allocation3 + $0x8] sm:$0xff]  ;;  %p951_p5 = pnand %p950_p4, %p1133_p9  ;;  %p956_p10 = por %p955_p8, %p954_p7 }
  0x45   : > { %p952_p6 = pneg %p951_p5 }
  0x47   : > { %p957_p11 = pnand %p956_p10, %p952_p6 }
  0xbc   : > { %v380_v13 = vpop.f32.mrf.mxu0 }
  0xbd   : > { %v397_v14 = vsel %vm395_vm2, -1e+30, %v380_v13 }
  0xbe   : > { %v402_v15 = vsel %vm401_vm3, %v397_v14, -inf }
  0xbf   : > { %403 = vmax.xlane.f32.xlu0 %v402_v15 }
  0xc4   : > { %v382_v17 = vpop.f32.mrf.mxu0 }
  0xc5   : > { %v398_v18 = vsel %vm396_vm4, -1e+30, %v382_v17 }
  0xc6   : > { %v405_v19 = vsel %vm401_vm3, %v398_v18, -inf }
  0xc7   : > { %406 = vmax.xlane.f32.xlu0 %v405_v19 }
 0x132   : > { %v404_v22 = vpop.xlane.xlu0 %403 }
 0x133   : > { %v408_v23 = vmax.f32 %v399_v21, %v404_v22 }
 0x135   : > { %v410_v24 = vsub.f32 %v399_v21, %v408_v23  ;;  %491 = vst.msk [vmem:[#allocation2] sm:$0xff] %vm335_vm1, %v408_v23  ;;  %418 = vperm.xlu1 %828, %v408_v23  }
 0x137   : > { %v412_v25 = vmul.f32 1.442695, %v410_v24 }
 0x139   : > { %831 = vpow2.f32 %v412_v25 }
 0x13a   : > { %v407_v27 = vpop.xlane.xlu0 %406 }
 0x13b   : > { %v409_v28 = vmax.f32 %v400_v26, %v407_v27 }
 0x13d   : > { %v411_v29 = vsub.f32 %v400_v26, %v409_v28  ;;  %492 = vst.msk [vmem:[#allocation2 + $0x8] sm:$0xff] %vm335_vm1, %v409_v28  ;;  %423 = vperm.xlu1 %828, %v409_v28  }
 0x13f   : > { %v832_v30 = vpop.eup %831  ;;  %v414_v31 = vmul.f32 1.442695, %v411_v29 }
 0x140   : > { %451 = vperm.xlu0 %829, %v832_v30   ;;  %v434_v46 = vmul.f32 %v832_v30, %v432_v45 }
 0x141   : > { %833 = vpow2.f32 %v414_v31 }
 0x147   : > { %v834_v32 = vpop.eup %833 }
 0x148   : > { %456 = vperm.xlu1 %828, %v834_v32   ;;  %v435_v50 = vmul.f32 %v834_v32, %v433_v49 }
 0x1a7   : > { %v419_v34 = vpop.permute.xlu1 %418 }
 0x1a8   : > { %v426_v35 = vsub.f32 %v397_v14, %v419_v34 }
 0x1aa   : > { %v428_v36 = vmul.f32 1.442695, %v426_v35 }
 0x1ac   : > { %835 = vpow2.f32 %v428_v36 }
 0x1af   : > { %v424_v37 = vpop.permute.xlu1 %423 }
 0x1b0   : > { %v427_v38 = vsub.f32 %v398_v18, %v424_v37 }
 0x1b2   : > { %v836_v39 = vpop.eup %835  ;;  %v430_v40 = vmul.f32 1.442695, %v427_v38  ;;  %v452_v55 = vpop.permute.xlu0 %451 }
 0x1b3   : > { %v436_v41 = vsel %vm401_vm3, %v836_v39, 0.0  ;;  %v459_v57 = vmul.f32 %v452_v55, %v447_v54 }
 0x1b4   : > { %837 = vpow2.f32 %v430_v40  ;;  %437 = vadd.xlane.f32.xlu2 %v436_v41 }
 0x1ba   : > { %v838_v42 = vpop.eup %837  ;;  %v457_v62 = vpop.permute.xlu1 %456 }
 0x1bb   : > { %v439_v43 = vsel %vm401_vm3, %v838_v42, 0.0  ;;  %v461_v44 = vpack.c.bf16 %v838_v42, %v836_v39  ;;  %v460_v0 = vmul.f32 %v457_v62, %v448_v61 }
 0x1bc   : > { %440 = vadd.xlane.f32.xlu2 %v439_v43 }
 0x1bd   : > { %720 = vmatmul.msk.bf16.vlgmr.msra.gmra.mxu1 %vm401_vm3, %v461_v44 }
 0x227   : > { %v438_v47 = vpop.xlane.xlu2 %437 }
 0x228   : > { %v442_v48 = vadd.f32 %v438_v47, %v434_v46 }
 0x22a   : > { %445 = vst.msk [vmem:[#allocation3] sm:$0xff] %vm335_vm1, %v442_v48 }
 0x22f   : > { %v441_v51 = vpop.xlane.xlu2 %440 }
 0x230   : > { %v443_v52 = vadd.f32 %v441_v51, %v435_v50 }
 0x231   : > { %v496_v53 = vld [vmem:[#allocation3] sm:$0xff] }
 0x232   : > { %446 = vst.msk [vmem:[#allocation3 + $0x8] sm:$0xff] %vm335_vm1, %v443_v52  ;;  %839 = vrcp.f32 %v496_v53 }
 0x238   : > { %v840_v56 = vpop.eup %839 }
 0x239   : > { %504 = vperm.xlu2 %830, %v840_v56   ;;  %v497_v58 = vld [vmem:[#allocation3 + $0x8] sm:$0xff] }
 0x23a   : > { %v482_v59 = vpop.f32.mrf.mxu1  ;;  %841 = vrcp.f32 %v497_v58 }
 0x23b   : > { %v487_v60 = vadd.f32 %v482_v59, %v459_v57 }
 0x23d   : > { %489 = vst.msk [vmem:[#allocation4] sm:$0xff] %vm340_vm0, %v487_v60 }
 0x240   : > { %v842_v63 = vpop.eup %841 }
 0x241   : > { %509 = vperm.xlu1 %828, %v842_v63  }
 0x242   : > { %v484_v1 = vpop.f32.mrf.mxu1 }
 0x243   : > { %v488_v2 = vadd.f32 %v484_v1, %v460_v0 }
 0x244   : > { %v500_v3 = vld [vmem:[#allocation4] sm:$0xff] }
 0x245   : > { %490 = vst.msk [vmem:[#allocation4 + $0x8] sm:$0xff] %vm340_vm0, %v488_v2 }
 0x24c   : > { %v501_v6 = vld [vmem:[#allocation4 + $0x8] sm:$0xff] }
 0x293   : > { %v505_v4 = vpop.permute.xlu2 %504 }
 0x294   : > { %v512_v5 = vmul.f32 %v505_v4, %v500_v3 }
 0x296   : > { %515 = vst.msk [vmem:[%s325_s27] sm:$0xff] %vm340_vm0, %v512_v5 }
 0x2b3   : > { %v510_v7 = vpop.permute.xlu1 %509 }
 0x2b4   : > { %v513_v8 = vmul.f32 %v510_v7, %v501_v6 }
 0x2b6   : > { %516 = vst.msk [vmem:[%s325_s27 + $0x8] sm:$0xff] %vm340_vm0, %v513_v8 }
 0x2b7   : > { %960 = shalt.err (!%p957_p11)
}
 0x2b8   : > { %s1042_s9 = smov 128   ;;  %s1043_s7 = smov 8  }
 0x2b9   : > { %739 = dma.vmem_to_hbm [thread:$0]  (%p1133_p9), %s535_s29, 256, %s537_s30, %s518_s24, %s1042_s9, %s1042_s9, %s1043_s7  }
 0x2ba PF: > { %s1297_s12 = sld [smem:[#allocation15_spill]]  ;;  %p756_p13 = scmp.ge.s32.totalorder %s1035_s19, 2 }
 0x2bc   : > { %p752_p0 = pnand %p756_p13, %p1139_p12 }
 0x2be   : > { %p753_p1 = pneg %p752_p0 }
 0x2c0   : > { %s551_s17 = sand.u32 1, %s1297_s12  }
 0x2c1   : > { %s552_s18 = scalar_lea.sflag [#allocation7], %s551_s17 }
 0x2c2   : > { %1002 = dma.done.wait (%p753_p1), %s552_s18, 256  }
 0x2c3   : > { %1004 = vsyncadd (%p753_p1), %s552_s18, 4294967040  ;;  %s22_s19 = sadd.s32 1, %s1035_s19   ;;  %s1299_s20 = sld [smem:[#allocation16_spill]] }
 0x2c4   : > { %p19_p2 = scmp.ge.s32.totalorder %s22_s19, 10   ;;  %s1300_s14 = sld [smem:[#allocation22_spill]] }
 0x2c5   : > { %s1301_s15 = sld [smem:[#allocation17_spill]]  ;;  %s1305_s12 = smov %s1011_s13 }
 0x2c6   : > { %s1302_s16 = sld [smem:[#allocation18_spill]]  ;;  %21 = sbr.rel (!%p19_p2) target bundleno = 11 (0xb), region = 113 }
 0x2c7   : > { %s1303_s17 = sld [smem:[#allocation19_spill]] }
 0x2c8   : > { %s1304_s18 = sld [smem:[#allocation20_spill]] }
 0x2c9   : > { %s1306_s13 = smov %s1299_s20 }
 0x2cb   :  { %558 = vsyncpa [#allocation6], 1 }
 0x2cc   :  { %560 = vsyncpa [#allocation6 + $0x1], 1 }
 0x2cd   :  { %561 = vsyncpa [#allocation9], 1 }
 0x2ce   :  { %563 = vsyncpa [#allocation9 + $0x1], 1 }
 0x2cf   :  { %564 = vsyncpa [#allocation7], 1 }
 0x2d0   :  { %566 = vsyncpa [#allocation7 + $0x1], 1 }

</bundles_post_ra>
